<compile_context>
chip_gen: v5e
topology: v5e:2x2
jax: 0.10.0
libtpu: 0.0.40
codegen_flags: <defaults>
</compile_context>

<pallas_src>
import functools
import math

import jax
import jax.numpy as jnp
import numpy as np
from jax.experimental import pallas as pl
from jax.experimental.pallas import tpu as pltpu

_LOG_SQRT_2PI = 0.5 * math.log(2.0 * math.pi)
_SINGLE_BLOCK_MAX = 256       # whole batch in one block up to here
_MAX_ROWS_PER_BLOCK = 4096    # cap rows per block for very large batches


def _round_up(x, m):
    return ((x + m - 1) // m) * m


# ----------------------------------------------------------------------------
# Kernel body (shared by the single-block and multi-block variants).
# ----------------------------------------------------------------------------
def _action_module_kernel(single_block, x_ref, w1_ref, b1_ref, w2_ref, b2_ref,
                          w3_ref, b3_ref, wh_ref, bh_ref, z_ref, *rest):
    if single_block:
        (out_ref,) = rest
        a0_ref = None
    else:
        a0_ref, out_ref = rest

    A = wh_ref.shape[1] // 2

    h = jnp.maximum(
        jnp.dot(x_ref[...], w1_ref[...], preferred_element_type=jnp.float32)
        + b1_ref[...], 0.0)
    h = jnp.maximum(
        jnp.dot(h, w2_ref[...], preferred_element_type=jnp.float32)
        + b2_ref[...], 0.0)
    h = jnp.maximum(
        jnp.dot(h, w3_ref[...], preferred_element_type=jnp.float32)
        + b3_ref[...], 0.0)

    # Fused mu/sigma head: one (H, 2A) matmul, split along lanes afterwards.
    head = (jnp.dot(h, wh_ref[...], preferred_element_type=jnp.float32)
            + bh_ref[...])                                    # (TB, 2A)
    mu = jnp.tanh(head[:, 0:A])
    # epsilon inside the sigmoid argument, exactly as in the PyTorch reference
    sigma = jax.nn.sigmoid(head[:, A:2 * A] + 1e-05)

    z = z_ref[0, 0]
    action = jnp.clip(mu + sigma * z, -1.0, 1.0)

    if single_block:
        action0 = action[0:1]          # batch row 0 is row 0 of this block
    else:
        action0 = a0_ref[...]          # precomputed clipped action of row 0

    # Normal(mu, sigma).log_prob(action[0]) — approx reciprocal on the EUP.
    inv_var = pl.reciprocal(sigma * sigma, approx=True)
    diff = action0 - mu
    log_prob = -(diff * diff) * (0.5 * inv_var) - jnp.log(sigma) - _LOG_SQRT_2PI

    out_ref[...] = jnp.concatenate([mu, sigma, action, log_prob], axis=1)


# ----------------------------------------------------------------------------
# Wrapper
# ----------------------------------------------------------------------------
def action_module_forward(x, params, z):
    """x: (B, feature_extractor) f32.  params: dict from prepare_params().
    z: scalar standard-normal sample (Normal(0,1).sample() in the reference)."""
    B, F = x.shape
    H = params["w1"].shape[1]
    A = params["w_head"].shape[1] // 2

    z2d = jnp.reshape(z.astype(jnp.float32), (1, 1))
    resident = lambda i: (0, 0)        # weights/biases stay resident across blocks

    if B <= _SINGLE_BLOCK_MAX:
        TB, nb, single_block = B, 1, True
    else:
        # >= 2 blocks so both v7x TensorCores participate; rows per block
        # rounded up to 8 sublanes and capped.
        TB = min(_MAX_ROWS_PER_BLOCK, _round_up(pl.cdiv(B, 2), 8))
        nb = pl.cdiv(B, TB)
        single_block = False

    in_specs = [
        pl.BlockSpec((TB, F), lambda i: (i, 0)),
        pl.BlockSpec((F, H), resident),
        pl.BlockSpec((1, H), resident),
        pl.BlockSpec((H, H), resident),
        pl.BlockSpec((1, H), resident),
        pl.BlockSpec((H, H), resident),
        pl.BlockSpec((1, H), resident),
        pl.BlockSpec((H, 2 * A), resident),
        pl.BlockSpec((1, 2 * A), resident),
        pl.BlockSpec((1, 1), resident, memory_space=pltpu.MemorySpace.SMEM),
    ]
    args = [x, params["w1"], params["b1"], params["w2"], params["b2"],
            params["w3"], params["b3"], params["w_head"], params["b_head"], z2d]

    if not single_block:
        # Row 0's clipped action is needed by every block; compute it once here
        # (one row through the tiny MLP) instead of re-running row 0 per block.
        x0 = x[0:1]
        h = jax.nn.relu(x0 @ params["w1"] + params["b1"])
        h = jax.nn.relu(h @ params["w2"] + params["b2"])
        h = jax.nn.relu(h @ params["w3"] + params["b3"])
        head0 = h @ params["w_head"] + params["b_head"]
        mu0 = jnp.tanh(head0[:, 0:A])
        sigma0 = jax.nn.sigmoid(head0[:, A:2 * A] + 1e-05)
        action0 = jnp.clip(mu0 + sigma0 * z2d[0, 0], -1.0, 1.0)
        in_specs.append(pl.BlockSpec((1, A), resident))
        args.append(action0)

    out = pl.pallas_call(
        functools.partial(_action_module_kernel, single_block),
        out_shape=jax.ShapeDtypeStruct((B, 4 * A), jnp.float32),
        grid=(nb,),
        in_specs=in_specs,
        out_specs=pl.BlockSpec((TB, 4 * A), lambda i: (i, 0)),
        compiler_params=pltpu.CompilerParams(
            dimension_semantics=("parallel",)),   # v7x: both TCs take row blocks
    )(*args)

    mu = out[:, 0 * A:1 * A]
    sigma = out[:, 1 * A:2 * A]
    action = out[:, 2 * A:3 * A]
    log_prob = out[:, 3 * A:4 * A]
    return mu, sigma, action, log_prob


# ----------------------------------------------------------------------------
# Deterministic parameter construction (mirrors nn.Linear / NormedLinear).
# ----------------------------------------------------------------------------
def init_params(key, feature_extractor, last_hidden, n_action):
    def linear(key, fan_in, fan_out):
        kw, kb = jax.random.split(key)
        bound = 1.0 / math.sqrt(fan_in)
        # PyTorch weight is (out, in); keep that for the norm, transpose after.
        w = jax.random.uniform(kw, (fan_out, fan_in), jnp.float32, -bound, bound)
        b = jax.random.uniform(kb, (1, fan_out), jnp.float32, -bound, bound)
        return w, b

    def normed_linear(key, fan_in, fan_out, scale=0.1):
        w, b = linear(key, fan_in, fan_out)
        w = w * (scale / jnp.linalg.norm(w, ord=2, axis=1, keepdims=True))
        return w, b

    k1, k2, k3, k4, k5 = jax.random.split(key, 5)
    w1, b1 = linear(k1, feature_extractor, last_hidden)
    w2, b2 = linear(k2, last_hidden, last_hidden)
    w3, b3 = linear(k3, last_hidden, last_hidden)
    wmu, bmu = normed_linear(k4, last_hidden, n_action, scale=0.1)
    wsg, bsg = normed_linear(k5, last_hidden, n_action, scale=0.1)
    return {"w1": w1.T, "b1": b1, "w2": w2.T, "b2": b2, "w3": w3.T, "b3": b3,
            "wmu": wmu.T, "bmu": bmu, "wsg": wsg.T, "bsg": bsg}


def prepare_params(p):
    """One-time fusion of the mu/sigma head into a single (H, 2A) operand."""
    q = dict(p)
    q["w_head"] = jnp.concatenate([p["wmu"], p["wsg"]], axis=1)
    q["b_head"] = jnp.concatenate([p["bmu"], p["bsg"]], axis=1)
    return q


def reference_forward(x, p, z):
    """Pure-JAX mirror of the PyTorch forward, for correctness asserts."""
    h1 = jax.nn.relu(x @ p["w1"] + p["b1"])
    h2 = jax.nn.relu(h1 @ p["w2"] + p["b2"])
    h3 = jax.nn.relu(h2 @ p["w3"] + p["b3"])
    mu = jnp.tanh(h3 @ p["wmu"] + p["bmu"])
    sigma = jax.nn.sigmoid(h3 @ p["wsg"] + p["bsg"] + 1e-05)
    action = jnp.clip(mu + sigma * z, -1.0, 1.0)
    log_prob = (-((action[0:1] - mu) ** 2) / (2.0 * sigma * sigma)
                - jnp.log(sigma) - _LOG_SQRT_2PI)
    return mu, sigma, action, log_prob


def _check(outs, refs):
    # mu / sigma / action: exact math (only MXU matmul rounding differs).
    for got, want in zip(outs[:3], refs[:3]):
        np.testing.assert_allclose(np.asarray(got), np.asarray(want),
                                   rtol=5e-4, atol=5e-4)
    # log_prob: looser — pl.reciprocal(approx=True) uses the EUP vrcp estimate.
    np.testing.assert_allclose(np.asarray(outs[3]), np.asarray(refs[3]),
                               rtol=5e-3, atol=5e-3)


if __name__ == "__main__":
    # ActionModule hyper-params: n_hidden=16, n_rnn_layers=1, rnn_directions=1,
    # use_handcraft=0, n_handcrafted_features=0 -> feature_extractor=16,
    # last_hidden=32, n_action=1.
    n_hidden, n_rnn_layers, rnn_directions = 16, 1, 1
    n_handcrafted_features, use_handcraft = 0, 0
    n_action = 1
    feature_extractor = (n_hidden * n_rnn_layers * rnn_directions
                         + n_handcrafted_features * use_handcraft)
    last_hidden = feature_extractor * 2

    key = jax.random.PRNGKey(0)
    k_x, k_p, k_z, k_xl = jax.random.split(key, 4)

    raw = init_params(k_p, feature_extractor, last_hidden, n_action)
    params = prepare_params(raw)
    z = jax.random.normal(k_z, (), jnp.float32)   # Normal(0, 1).sample()

    # TODO(synk): the PyTorch try/except ValueError fallback (which uses an
    # undefined self.glucose_target) is dead code here: sigma = sigmoid(.) > 0.

    # --- shipped config: batch=2 (single-block path) ---
    x_small = jax.random.normal(k_x, (2, feature_extractor), jnp.float32)
    outs = action_module_forward(x_small, params, z)
    jax.block_until_ready(outs)
    _check(outs, reference_forward(x_small, raw, z))

    # --- larger batch: exercises the multi-block / two-TensorCore path and
    #     the masked partial final block (520 rows, 2 blocks of 264) ---
    x_large = jax.random.normal(k_xl, (520, feature_extractor), jnp.float32)
    outs_l = action_module_forward(x_large, params, z)
    jax.block_until_ready(outs_l)
    _check(outs_l, reference_forward(x_large, raw, z))

    print("KERNEL_OK")
</pallas_src>

<mosaic_0001>
module attributes {stable_mosaic.version = 11 : i64} {
  func.func @_action_module_kernel(%arg0: i32, %arg1: memref<2x16xf32, #tpu.memory_space<vmem>>, %arg2: memref<16x32xf32, #tpu.memory_space<vmem>>, %arg3: memref<1x32xf32, #tpu.memory_space<vmem>>, %arg4: memref<32x32xf32, #tpu.memory_space<vmem>>, %arg5: memref<1x32xf32, #tpu.memory_space<vmem>>, %arg6: memref<32x32xf32, #tpu.memory_space<vmem>>, %arg7: memref<1x32xf32, #tpu.memory_space<vmem>>, %arg8: memref<32x2xf32, #tpu.memory_space<vmem>>, %arg9: memref<1x2xf32, #tpu.memory_space<vmem>>, %arg10: memref<1x1xf32, #tpu.memory_space<smem>>, %arg11: memref<2x4xf32, #tpu.memory_space<vmem>>) attributes {dimension_semantics = [#tpu.dimension_semantics<parallel>], iteration_bounds = array<i64: 1>, scalar_prefetch = 0 : i64, scratch_operands = 0 : i64, tpu.core_type = #tpu.core_type<tc>, window_params = [{transform_indices = @transform_0, window_bounds = array<i64: 2, 16>}, {pipeline_mode = #tpu.pipeline_mode<synchronous>, transform_indices = @transform_1, window_bounds = array<i64: 16, 32>}, {pipeline_mode = #tpu.pipeline_mode<synchronous>, transform_indices = @transform_2, window_bounds = array<i64: 1, 32>}, {pipeline_mode = #tpu.pipeline_mode<synchronous>, transform_indices = @transform_3, window_bounds = array<i64: 32, 32>}, {pipeline_mode = #tpu.pipeline_mode<synchronous>, transform_indices = @transform_4, window_bounds = array<i64: 1, 32>}, {pipeline_mode = #tpu.pipeline_mode<synchronous>, transform_indices = @transform_5, window_bounds = array<i64: 32, 32>}, {pipeline_mode = #tpu.pipeline_mode<synchronous>, transform_indices = @transform_6, window_bounds = array<i64: 1, 32>}, {pipeline_mode = #tpu.pipeline_mode<synchronous>, transform_indices = @transform_7, window_bounds = array<i64: 32, 2>}, {pipeline_mode = #tpu.pipeline_mode<synchronous>, transform_indices = @transform_8, window_bounds = array<i64: 1, 2>}, {transform_indices = @transform_9, window_bounds = array<i64: 1, 1>}, {transform_indices = @transform_10, window_bounds = array<i64: 2, 4>}]} {
    %c0 = arith.constant 0 : index
    %c0_0 = arith.constant 0 : index
    %0 = vector.load %arg1[%c0, %c0_0] : memref<2x16xf32, #tpu.memory_space<vmem>>, vector<2x16xf32>
    %c0_1 = arith.constant 0 : index
    %c0_2 = arith.constant 0 : index
    %1 = vector.load %arg2[%c0_1, %c0_2] : memref<16x32xf32, #tpu.memory_space<vmem>>, vector<16x32xf32>
    %cst = arith.constant dense<0.000000e+00> : vector<2x32xf32>
    %2 = tpu.matmul %0, %1, %cst {dimension_numbers = #tpu.dot_dimension_numbers<[1], [0], [0], [1], [0, 0, 1, 1], [], []>} : vector<2x16xf32>, vector<16x32xf32>, vector<2x32xf32> -> vector<2x32xf32>
    %c0_3 = arith.constant 0 : index
    %c0_4 = arith.constant 0 : index
    %3 = vector.load %arg3[%c0_3, %c0_4] : memref<1x32xf32, #tpu.memory_space<vmem>>, vector<1x32xf32>
    %4 = vector.broadcast %3 : vector<1x32xf32> to vector<2x32xf32>
    %5 = arith.addf %2, %4 : vector<2x32xf32>
    %cst_5 = arith.constant 0.000000e+00 : f32
    %6 = vector.broadcast %cst_5 : f32 to vector<2x32xf32>
    %7 = arith.maximumf %5, %6 : vector<2x32xf32>
    %c0_6 = arith.constant 0 : index
    %c0_7 = arith.constant 0 : index
    %8 = vector.load %arg4[%c0_6, %c0_7] : memref<32x32xf32, #tpu.memory_space<vmem>>, vector<32x32xf32>
    %cst_8 = arith.constant dense<0.000000e+00> : vector<2x32xf32>
    %9 = tpu.matmul %7, %8, %cst_8 {dimension_numbers = #tpu.dot_dimension_numbers<[1], [0], [0], [1], [0, 0, 1, 1], [], []>} : vector<2x32xf32>, vector<32x32xf32>, vector<2x32xf32> -> vector<2x32xf32>
    %c0_9 = arith.constant 0 : index
    %c0_10 = arith.constant 0 : index
    %10 = vector.load %arg5[%c0_9, %c0_10] : memref<1x32xf32, #tpu.memory_space<vmem>>, vector<1x32xf32>
    %11 = vector.broadcast %10 : vector<1x32xf32> to vector<2x32xf32>
    %12 = arith.addf %9, %11 : vector<2x32xf32>
    %cst_11 = arith.constant 0.000000e+00 : f32
    %13 = vector.broadcast %cst_11 : f32 to vector<2x32xf32>
    %14 = arith.maximumf %12, %13 : vector<2x32xf32>
    %c0_12 = arith.constant 0 : index
    %c0_13 = arith.constant 0 : index
    %15 = vector.load %arg6[%c0_12, %c0_13] : memref<32x32xf32, #tpu.memory_space<vmem>>, vector<32x32xf32>
    %cst_14 = arith.constant dense<0.000000e+00> : vector<2x32xf32>
    %16 = tpu.matmul %14, %15, %cst_14 {dimension_numbers = #tpu.dot_dimension_numbers<[1], [0], [0], [1], [0, 0, 1, 1], [], []>} : vector<2x32xf32>, vector<32x32xf32>, vector<2x32xf32> -> vector<2x32xf32>
    %c0_15 = arith.constant 0 : index
    %c0_16 = arith.constant 0 : index
    %17 = vector.load %arg7[%c0_15, %c0_16] : memref<1x32xf32, #tpu.memory_space<vmem>>, vector<1x32xf32>
    %18 = vector.broadcast %17 : vector<1x32xf32> to vector<2x32xf32>
    %19 = arith.addf %16, %18 : vector<2x32xf32>
    %cst_17 = arith.constant 0.000000e+00 : f32
    %20 = vector.broadcast %cst_17 : f32 to vector<2x32xf32>
    %21 = arith.maximumf %19, %20 : vector<2x32xf32>
    %c0_18 = arith.constant 0 : index
    %c0_19 = arith.constant 0 : index
    %22 = vector.load %arg8[%c0_18, %c0_19] : memref<32x2xf32, #tpu.memory_space<vmem>>, vector<32x2xf32>
    %cst_20 = arith.constant dense<0.000000e+00> : vector<2x2xf32>
    %23 = tpu.matmul %21, %22, %cst_20 {dimension_numbers = #tpu.dot_dimension_numbers<[1], [0], [0], [1], [0, 0, 1, 1], [], []>} : vector<2x32xf32>, vector<32x2xf32>, vector<2x2xf32> -> vector<2x2xf32>
    %c0_21 = arith.constant 0 : index
    %c0_22 = arith.constant 0 : index
    %24 = vector.load %arg9[%c0_21, %c0_22] : memref<1x2xf32, #tpu.memory_space<vmem>>, vector<1x2xf32>
    %25 = vector.broadcast %24 : vector<1x2xf32> to vector<2x2xf32>
    %26 = arith.addf %23, %25 : vector<2x2xf32>
    %27 = vector.extract_strided_slice %26 {offsets = [0, 0], sizes = [2, 1], strides = [1, 1]} : vector<2x2xf32> to vector<2x1xf32>
    %28 = math.tanh %27 : vector<2x1xf32>
    %29 = vector.extract_strided_slice %26 {offsets = [0, 1], sizes = [2, 1], strides = [1, 1]} : vector<2x2xf32> to vector<2x1xf32>
    %cst_23 = arith.constant 9.99999974E-6 : f32
    %30 = vector.broadcast %cst_23 : f32 to vector<2x1xf32>
    %31 = arith.addf %29, %30 : vector<2x1xf32>
    %32 = arith.negf %31 : vector<2x1xf32>
    %33 = math.exp %32 : vector<2x1xf32>
    %cst_24 = arith.constant 1.000000e+00 : f32
    %34 = vector.broadcast %cst_24 : f32 to vector<2x1xf32>
    %35 = arith.addf %34, %33 : vector<2x1xf32>
    %36 = arith.divf %34, %35 : vector<2x1xf32>
    %c0_25 = arith.constant 0 : index
    %c0_26 = arith.constant 0 : index
    %37 = memref.load %arg10[%c0_25, %c0_26] : memref<1x1xf32, #tpu.memory_space<smem>>
    %38 = vector.broadcast %37 : f32 to vector<2x1xf32>
    %39 = arith.mulf %36, %38 : vector<2x1xf32>
    %40 = arith.addf %28, %39 : vector<2x1xf32>
    %cst_27 = arith.constant -1.000000e+00 : f32
    %cst_28 = arith.constant 1.000000e+00 : f32
    %41 = vector.broadcast %cst_27 : f32 to vector<2x1xf32>
    %42 = arith.maximumf %41, %40 : vector<2x1xf32>
    %43 = vector.broadcast %cst_28 : f32 to vector<2x1xf32>
    %44 = arith.minimumf %43, %42 : vector<2x1xf32>
    %45 = vector.extract_strided_slice %44 {offsets = [0, 0], sizes = [1, 1], strides = [1, 1]} : vector<2x1xf32> to vector<1x1xf32>
    %46 = arith.mulf %36, %36 : vector<2x1xf32>
    %47 = tpu.reciprocal %46 {approx = true} : vector<2x1xf32> -> vector<2x1xf32>
    %48 = vector.broadcast %45 : vector<1x1xf32> to vector<2x1xf32>
    %49 = arith.subf %48, %28 : vector<2x1xf32>
    %50 = arith.mulf %49, %49 : vector<2x1xf32>
    %cst_29 = arith.constant 0.000000e+00 : f32
    %51 = vector.broadcast %cst_29 : f32 to vector<2x1xf32>
    %52 = arith.subf %51, %50 : vector<2x1xf32>
    %cst_30 = arith.constant 5.000000e-01 : f32
    %53 = vector.broadcast %cst_30 : f32 to vector<2x1xf32>
    %54 = arith.mulf %53, %47 : vector<2x1xf32>
    %55 = arith.mulf %52, %54 : vector<2x1xf32>
    %56 = math.log %36 : vector<2x1xf32>
    %57 = arith.subf %55, %56 : vector<2x1xf32>
    %cst_31 = arith.constant 0.918938517 : f32
    %58 = vector.broadcast %cst_31 : f32 to vector<2x1xf32>
    %59 = arith.subf %57, %58 : vector<2x1xf32>
    %60 = tpu.concatenate %28, %36, %44, %59 in 1 : vector<2x1xf32>, vector<2x1xf32>, vector<2x1xf32>, vector<2x1xf32> -> vector<2x4xf32>
    %c0_32 = arith.constant 0 : index
    %c0_33 = arith.constant 0 : index
    %61 = vector.load %arg11[%c0_32, %c0_33] : memref<2x4xf32, #tpu.memory_space<vmem>>, vector<2x4xf32>
    tpu.vector_store %arg11[%c0_32, %c0_33], %60 {strides = array<i32>} : memref<2x4xf32, #tpu.memory_space<vmem>>, vector<2x4xf32>,
    return
  }
  func.func @transform_0(%arg0: i32) -> (i32, i32) {
    %c0_i32 = arith.constant 0 : i32
    %c0_i32_0 = arith.constant 0 : i32
    return %arg0, %c0_i32 : i32, i32
  }
  func.func @transform_1(%arg0: i32) -> (i32, i32) {
    %c0_i32 = arith.constant 0 : i32
    %c0_i32_0 = arith.constant 0 : i32
    %c0_i32_1 = arith.constant 0 : i32
    return %c0_i32, %c0_i32_0 : i32, i32
  }
  func.func @transform_2(%arg0: i32) -> (i32, i32) {
    %c0_i32 = arith.constant 0 : i32
    %c0_i32_0 = arith.constant 0 : i32
    %c0_i32_1 = arith.constant 0 : i32
    return %c0_i32, %c0_i32_0 : i32, i32
  }
  func.func @transform_3(%arg0: i32) -> (i32, i32) {
    %c0_i32 = arith.constant 0 : i32
    %c0_i32_0 = arith.constant 0 : i32
    %c0_i32_1 = arith.constant 0 : i32
    return %c0_i32, %c0_i32_0 : i32, i32
  }
  func.func @transform_4(%arg0: i32) -> (i32, i32) {
    %c0_i32 = arith.constant 0 : i32
    %c0_i32_0 = arith.constant 0 : i32
    %c0_i32_1 = arith.constant 0 : i32
    return %c0_i32, %c0_i32_0 : i32, i32
  }
  func.func @transform_5(%arg0: i32) -> (i32, i32) {
    %c0_i32 = arith.constant 0 : i32
    %c0_i32_0 = arith.constant 0 : i32
    %c0_i32_1 = arith.constant 0 : i32
    return %c0_i32, %c0_i32_0 : i32, i32
  }
  func.func @transform_6(%arg0: i32) -> (i32, i32) {
    %c0_i32 = arith.constant 0 : i32
    %c0_i32_0 = arith.constant 0 : i32
    %c0_i32_1 = arith.constant 0 : i32
    return %c0_i32, %c0_i32_0 : i32, i32
  }
  func.func @transform_7(%arg0: i32) -> (i32, i32) {
    %c0_i32 = arith.constant 0 : i32
    %c0_i32_0 = arith.constant 0 : i32
    %c0_i32_1 = arith.constant 0 : i32
    return %c0_i32, %c0_i32_0 : i32, i32
  }
  func.func @transform_8(%arg0: i32) -> (i32, i32) {
    %c0_i32 = arith.constant 0 : i32
    %c0_i32_0 = arith.constant 0 : i32
    %c0_i32_1 = arith.constant 0 : i32
    return %c0_i32, %c0_i32_0 : i32, i32
  }
  func.func @transform_9(%arg0: i32) -> (i32, i32) {
    %c0_i32 = arith.constant 0 : i32
    %c0_i32_0 = arith.constant 0 : i32
    %c0_i32_1 = arith.constant 0 : i32
    return %c0_i32, %c0_i32_0 : i32, i32
  }
  func.func @transform_10(%arg0: i32) -> (i32, i32) {
    %c0_i32 = arith.constant 0 : i32
    %c0_i32_0 = arith.constant 0 : i32
    return %arg0, %c0_i32 : i32, i32
  }
}

</mosaic_0001>

<bundles_post_ra>
// kernel: tpu_custom_call.1
= control target key start
LH: loop header
LB: loop body
LE: loop exit
PB: predicated region body
PF: predicated region fallthrough
CT: control target
= control target key end

     0   :  { %16 = vsyncpa [#allocation4], 0  ;;  %s506_s0 = inlined_call_operand.vmem [shape: f32[2,16], index: 0, kind: input, shape index: {}]   ;;  %s507_s1 = inlined_call_operand.hbm [shape: f32[16,32], index: 1, kind: input, shape index: {}]   ;;  %s508_s2 = inlined_call_operand.vmem [shape: f32[1,32], index: 2, kind: input, shape index: {}]   ;;  %s509_s3 = inlined_call_operand.vmem [shape: f32[32,32], index: 3, kind: input, shape index: {}]   ;;  %s510_s4 = inlined_call_operand.vmem [shape: f32[1,32], index: 4, kind: input, shape index: {}]   ;;  %s511_s5 = inlined_call_operand.hbm [shape: f32[32,32], index: 5, kind: input, shape index: {}]   ;;  %s512_s6 = inlined_call_operand.vmem [shape: f32[1,32], index: 6, kind: input, shape index: {}]   ;;  %s513_s7 = inlined_call_operand.vmem [shape: f32[32,2], index: 7, kind: input, shape index: {}]   ;;  %s514_s8 = inlined_call_operand.vmem [shape: f32[1,2], index: 8, kind: input, shape index: {}]   ;;  %s515_s9 = inlined_call_operand.<no memory space> [shape: f32[1,1], index: 9, kind: input, shape index: {}]   ;;  %s516_s10 = inlined_call_operand.hbm [shape: f32[2,4], index: 10, kind: output, shape index: {}]  }
   0x1   :  { %17 = vsyncpa [#allocation7], 0 }
   0x2   :  { %18 = vsyncpa [#allocation5], 0  ;;  %s25_s15 = sshll.u32 %s507_s1, 4  ;;  %s389_s16 = smov [#allocation3]   ;;  %s26_s15 = int_to_ptr.hbm [resolvable:$true] %s25_s15 }
   0x3   :  { %s27_s17 = sshll.u32 %s389_s16, 4  ;;  %s44_s20 = sshll.u32 %s511_s5, 4  ;;  %s28_s17 = int_to_ptr.vmem [resolvable:$true] %s27_s17  ;;  %s45_s20 = int_to_ptr.hbm [resolvable:$true] %s44_s20 }
   0x4   :  { %s390_s21 = smov 128   ;;  %s391_s22 = smov 8  }
   0x5   :  { %33 = dma.hbm_to_vmem [thread:$0]  %s26_s15, 256, %s28_s17, [#allocation4], %s390_s21, %s390_s21, %s391_s22  }
   0x6   :  { %s392_s23 = smov [#allocation6]  }
   0x7   :  { %s46_s24 = sshll.u32 %s392_s23, 4  ;;  %s47_s24 = int_to_ptr.vmem [resolvable:$true] %s46_s24 }
   0x8   :  { %52 = dma.hbm_to_vmem [thread:$0]  %s45_s20, 512, %s47_s24, [#allocation7], %s390_s21, %s390_s21, %s391_s22  }
   0x9   :  { %383 = dma.done.wait [#allocation4], 256  }
   0xa   :  { %384 = vsyncadd [#allocation4], 4294967040 }
   0xb   :  { %385 = dma.done.wait [#allocation7], 512  }
   0xc   :  { %386 = vsyncadd [#allocation7], 4294966784  ;;  %v71_v0 = vld [vmem:[#allocation3 + $0x8] sm:$0xff]  ;;  %v70_v1 = vld [vmem:[#allocation3] sm:$0xff]  ;;  %vm76_vm0 = vcmask 130048   ;;  %vm109_vm1 = vcmask 261120   ;;  %v219_v42 = vstv %s515_s9 }
   0xd   :  { %94 = vmatpush.msra.mxu0 %v71_v0  ;;  %v69_v2 = vld [vmem:[%s506_s0] sm:$0x3]  ;;  %v104_v3 = vld [vmem:[%s509_s3 + $0x18] sm:$0xff]  ;;  %v103_v4 = vld [vmem:[%s509_s3 + $0x10] sm:$0xff]  ;;  %s394_s9 = smov 2   ;;  %s395_s1 = smov 3  }
   0xe   :  { %125 = vmatpush.msra.mxu1 %v104_v3  ;;  %v102_v5 = vld [vmem:[%s509_s3 + $0x8] sm:$0xff]  ;;  %v101_v6 = vld [vmem:[%s509_s3] sm:$0xff]  ;;  %v135_v13 = vld [vmem:[#allocation6 + $0x8] sm:$0xff]  ;;  %vm256_vm6 = vcmask 7168   ;;  %vm258_vm7 = vcmask 15360   ;;  %s396_s25 = smov [#allocation8]  }
   0xf   :  { %95 = vmatpush.msra.mxu0 %v70_v1  ;;  %v137_v7 = vld [vmem:[#allocation6 + $0x18] sm:$0xff]  ;;  %v297_v8 = vld [vmem:[%s508_s2] ss:$0 sm:$0xff]  ;;  %v134_v14 = vld [vmem:[#allocation6] sm:$0xff]  ;;  %s269_s5 = sshll.u32 %s396_s25, 4  ;;  %s271_s28 = sshll.u32 %s516_s10, 4  ;;  %s270_s5 = int_to_ptr.vmem [resolvable:$true] %s269_s5  ;;  %s272_s28 = int_to_ptr.hbm [resolvable:$true] %s271_s28 }
  0x10   :  { %282 = vmatmul.msk.f32.vlgmr.msra.gmra.mxu0 %vm76_vm0, %v69_v2  ;;  %126 = vmatpush.msra.mxu1 %v103_v4  ;;  %v136_v12 = vld [vmem:[#allocation6 + $0x10] sm:$0xff]  ;;  %v169_v15 = vld [vmem:[%s513_s7 + $0x18] sm:$0xff]  ;;  %v168_v20 = vld [vmem:[%s513_s7 + $0x10] sm:$0xff]  ;;  %vm260_vm8 = vcmask 23552   ;;  %vm262_vm9 = vcmask 25600  }
  0x11   :  { %157 = vmatpush.msra.mxu2 %v137_v7  ;;  %189 = vmatpush.msra.mxu3 %v169_v15  ;;  %v298_v16 = vld [vmem:[%s510_s4] ss:$0 sm:$0xff]  ;;  %v167_v21 = vld [vmem:[%s513_s7 + $0x8] sm:$0xff] }
  0x12   :  { %127 = vmatpush.msra.mxu1 %v102_v5  ;;  %v166_v22 = vld [vmem:[%s513_s7] sm:$0xff] }
  0x13   :  { %158 = vmatpush.msra.mxu2 %v136_v12  ;;  %190 = vmatpush.msra.mxu3 %v168_v20  ;;  %v299_v23 = vld [vmem:[%s512_s6] ss:$0 sm:$0xff] }
  0x14   :  { %128 = vmatpush.msra.mxu1 %v101_v6  ;;  %v300_v27 = vld [vmem:[%s514_s8] ss:$0 sm:$0xff]  ;;  %s393_s8 = smov 127  }
  0x15   :  { %159 = vmatpush.msra.mxu2 %v135_v13  ;;  %191 = vmatpush.msra.mxu3 %v167_v21 }
  0x17   :  { %160 = vmatpush.msra.mxu2 %v134_v14  ;;  %192 = vmatpush.msra.mxu3 %v166_v22 }
  0x8d   :  { %v97_v9 = vpop.f32.mrf.mxu0 }
  0x8e   :  { %v98_v10 = vadd.f32 %v297_v8, %v97_v9 }
  0x90   :  { %v100_v11 = vmax.f32 %v98_v10, 0.0 }
  0x92   :  { %283 = vmatmul.msk.f32.vlgmr.msra.gmra.mxu1 %vm109_vm1, %v100_v11 }
 0x10f   :  { %v130_v17 = vpop.f32.mrf.mxu1 }
 0x110   :  { %v131_v18 = vadd.f32 %v298_v16, %v130_v17 }
 0x112   :  { %v133_v19 = vmax.f32 %v131_v18, 0.0 }
 0x114   :  { %284 = vmatmul.msk.f32.vlgmr.msra.gmra.mxu2 %vm109_vm1, %v133_v19 }
 0x197   :  { %v162_v24 = vpop.f32.mrf.mxu2 }
 0x198   :  { %v163_v25 = vadd.f32 %v299_v23, %v162_v24 }
 0x19a   :  { %v165_v26 = vmax.f32 %v163_v25, 0.0 }
 0x19c   :  { %285 = vmatmul.msk.f32.vlgmr.msra.gmra.mxu3 %vm109_vm1, %v165_v26 }
 0x21f   :  { %v194_v28 = vpop.f32.mrf.mxu3 }
 0x220   :  { %v195_v29 = vadd.f32 %v300_v27, %v194_v28 }
 0x222   :  { %v198_v30 = vadd.f32 1e-05, %v195_v29 }
 0x224   :  { %v286_v31 = vmul.f32 -1.442695, %v198_v30 }
 0x226   :  { %301 = vpow2.f32 %v286_v31 }
 0x22c   :  { %v302_v32 = vpop.eup %301 }
 0x22d   :  { %v202_v33 = vadd.f32 1.0, %v302_v32 }
 0x22f   :  { %303 = vrcp.f32 %v202_v33  ;;  %v214_v37 = vand.u32 2147483648, %v202_v33  ;;  %v212_v39 = vand.u32 2147483647, %v202_v33  ;;  %vm208_vm3 = vweird.f32 %v202_v33 }
 0x231   :  { %v215_v41 = vor.u32 1.1754944e-38, %v214_v37  ;;  %vm213_vm5 = vcmp.eq.f32.partialorder %v212_v39, 8.507059e+37 }
 0x235   :  { %v304_v34 = vpop.eup %303 }
 0x236   :  { %v204_v35 = vmul.f32 %v304_v34, %v202_v33  ;;  %vm209_vm2 = vweird.f32 %v304_v34 }
 0x237   :  { %vm210_vm4 = vmor %vm208_vm3, %vm209_vm2 }
 0x238   :  { %v205_v36 = vsub.f32 1.0, %v204_v35 }
 0x23a   :  { %v206_v38 = vmul.f32 %v304_v34, %v205_v36 }
 0x23c   :  { %v207_v40 = vadd.f32 %v304_v34, %v206_v38 }
 0x23e   :  { %v211_v43 = vsel %vm210_vm4, %v304_v34, %v207_v40 }
 0x23f   :  { %v216_v44 = vsel %vm213_vm5, %v215_v41, %v211_v43 }
 0x240   :  { %v220_v45 = vmul.f32 %v219_v42, %v216_v44  ;;  %305 = vlog2.f32 %v216_v44  ;;  %v228_v46 = vmul.f32 %v216_v44, %v216_v44 }
 0x242   :  { %222 = vrot.lane.b32.xlu0 %v220_v45, %s393_s8  ;;  %307 = vrcp.f32 %v228_v46 }
 0x243   :  { %309 = vtanh.f32 %v195_v29 }
 0x246   :  { %v306_v47 = vpop.eup %305 }
 0x247   :  { %v241_v48 = vmul.f32 0.6931472, %v306_v47 }
 0x248   :  { %v308_v49 = vpop.eup %307 }
 0x249   :  { %243 = vrot.lane.b32.xlu1 %v241_v48, %s393_s8  ;;  %v234_v50 = vmul.f32 0.5, %v308_v49  ;;  %v310_v51 = vpop.eup %309 }
 0x24a   :  { %v257_v0 = vsel %vm256_vm6, %v310_v51, %v216_v44 }
 0x24b   :  { %236 = vrot.lane.b32.xlu0 %v234_v50, %s393_s8 }
 0x2b4   :  { %v223_v52 = vpop.permute.xlu0 %222 }
 0x2b5   :  { %v225_v53 = vadd.f32 %v310_v51, %v223_v52 }
 0x2b7   :  { %v287_v54 = vclamps-f32 %v225_v53, 1.0 }
 0x2b9   :  { %v230_v55 = vperm.slane %v287_v54, 0  ;;  %249 = vrot.lane.b32.xlu1 %v287_v54, %s394_s9 }
 0x2bb   :  { %v231_v56 = vsub.f32 %v230_v55, %v310_v51  ;;  %v244_v61 = vpop.permute.xlu1 %243 }
 0x2bd   :  { %v232_v57 = vmul.f32 %v231_v56, %v231_v56  ;;  %v237_v59 = vpop.permute.xlu0 %236 }
 0x2bf   :  { %v233_v58 = vsub.f32 0.0, %v232_v57 }
 0x2c1   :  { %v239_v60 = vmul.f32 %v237_v59, %v233_v58 }
 0x2c3   :  { %v246_v62 = vsub.f32 %v239_v60, %v244_v61 }
 0x2c5   :  { %v288_v63 = vadd.f32 -0.9189385, %v246_v62 }
 0x2c7   :  { %253 = vrot.lane.b32.xlu2 %v288_v63, %s395_s1 }
 0x321   :  { %v254_v2 = vpop.permute.xlu2 %253 }
 0x32b   :  { %v250_v1 = vpop.permute.xlu1 %249 }
 0x32c   :  { %v259_v3 = vsel %vm258_vm7, %v257_v0, %v250_v1 }
 0x32d   :  { %v261_v4 = vsel %vm260_vm8, %v259_v3, %v254_v2 }
 0x32e   :  { %263 = vst.msk [vmem:[#allocation8] sm:$0x3] %vm262_vm9, %v261_v4 }
 0x32f   :  { %274 = dma.vmem_to_hbm [thread:$0]  %s270_s5, 32, %s272_s28, [#allocation5]  }
 0x330   :  { %387 = dma.done.wait [#allocation5], 32  }
 0x331   :  { %388 = vsyncadd [#allocation5], 4294967264 }
 0x332   :  { %279 = vsyncpa [#allocation4], 1 }
 0x333   :  { %280 = vsyncpa [#allocation7], 1 }
 0x334   :  { %281 = vsyncpa [#allocation5], 1 }

</bundles_post_ra>
